<compile_context>
chip_gen: v6e
topology: v6e:2x2x1
jax: 0.10.0
libtpu: 0.0.40
codegen_flags: <defaults>
</compile_context>

<pallas_src>
import functools

import jax
import jax.numpy as jnp
from jax.experimental import pallas as pl
from jax.experimental.pallas import tpu as pltpu


def _swish_kernel(x_ref, o_ref):
    x = x_ref[...]
    # Stable logistic (single EUP transcendental); computed in the input dtype
    # (bf16-native on v6e/v7x, f32 for f32 inputs) for parity with torch.
    o_ref[...] = (x * jax.nn.sigmoid(x)).astype(o_ref.dtype)


_LANE_CANDIDATES = (2048, 1024, 512, 256, 128)  # lane-dense, multiples of 128
_BLOCK_BYTES_TARGET = 8 << 20                   # ~8 MiB input block per step
_VMEM_LIMIT_BYTES = 48 * 1024 * 1024            # 2x(8+8) MiB buffers + headroom,
                                                # under v7x's 64 MiB physical VMEM


def _pick_lanes(total: int) -> tuple[int, int]:
    """Largest lane width in _LANE_CANDIDATES dividing total; pad only as a
    last resort (total % 128 != 0)."""
    for lanes in _LANE_CANDIDATES:
        if total % lanes == 0:
            return lanes, 0
    lanes = min(_LANE_CANDIDATES[0], ((total + 127) // 128) * 128)
    pad = (-total) % lanes
    return lanes, pad


@functools.partial(jax.jit, donate_argnums=())
def swish(x: jax.Array) -> jax.Array:
    """Swish activation: x * sigmoid(x). Accepts any shape (e.g. NCHW)."""
    orig_shape = x.shape
    orig_dtype = x.dtype
    total = x.size
    if total == 0:
        return x
    itemsize = x.dtype.itemsize

    # Lane-dense 2D slab: (rows, lanes), lanes a multiple of 128.
    lanes, pad = _pick_lanes(total)
    xf = x.reshape(-1)
    if pad:
        # Only fires when total % 128 != 0; pads < lanes elements.
        xf = jnp.pad(xf, (0, pad))
    rows = (total + pad) // lanes
    x2 = xf.reshape(rows, lanes)

    # Multi-MiB row tiles aligned to the dtype's sublane packing
    # (8 rows/f32, 16/bf16-f16, 32/int8-fp8); last block may be ragged.
    pack = max(8, 32 // itemsize)
    tile_r = max(1, _BLOCK_BYTES_TARGET // (lanes * itemsize))
    if tile_r >= rows:
        tile_r = rows  # single block spans the full row dim
    else:
        tile_r = max(pack, (tile_r // pack) * pack)

    grid = (pl.cdiv(rows, tile_r),)

    cost = pl.CostEstimate(
        flops=5 * total,
        transcendentals=total,
        bytes_accessed=2 * total * itemsize,
    )

    out = pl.pallas_call(
        _swish_kernel,
        out_shape=jax.ShapeDtypeStruct((rows, lanes), orig_dtype),
        grid_spec=pltpu.PrefetchScalarGridSpec(
            num_scalar_prefetch=0,
            grid=grid,
            in_specs=[pl.BlockSpec((tile_r, lanes), lambda i: (i, 0))],
            out_specs=pl.BlockSpec((tile_r, lanes), lambda i: (i, 0)),
        ),
        compiler_params=pltpu.CompilerParams(
            dimension_semantics=("parallel",),
            vmem_limit_bytes=_VMEM_LIMIT_BYTES,
        ),
        cost_estimate=cost,
    )(x2)

    out = out.reshape(-1)
    if pad:
        out = out[:total]
    return out.reshape(orig_shape)


if __name__ == "__main__":
    key = jax.random.PRNGKey(0)
    # NCHW, consistent with conv-style usage in the source model.
    x = jax.random.normal(key, (2, 4, 16, 16), dtype=jnp.float32)

    y = swish(x)
    jax.block_until_ready(y)

    # Correctness check against plain JAX reference.
    y_ref = x * jax.nn.sigmoid(x)
    assert y.shape == x.shape and y.dtype == x.dtype
    assert jnp.allclose(y, y_ref, atol=1e-5, rtol=1e-5)

    # Extra shapes: exercises non-2048-divisible (lanes fallback) and the
    # rare pad path (total % 128 != 0).
    for shape in ((2, 3, 16, 16), (3, 5, 7)):
        xi = jax.random.normal(jax.random.PRNGKey(1), shape, dtype=jnp.float32)
        yi = swish(xi)
        jax.block_until_ready(yi)
        assert jnp.allclose(yi, xi * jax.nn.sigmoid(xi), atol=1e-5, rtol=1e-5)

    print("KERNEL_OK")
</pallas_src>

<mosaic_0001>
module attributes {stable_mosaic.version = 11 : i64} {
  func.func @_swish_kernel(%arg0: i32, %arg1: memref<1x2048xf32, #tpu.memory_space<vmem>>, %arg2: memref<1x2048xf32, #tpu.memory_space<vmem>>) attributes {dimension_semantics = [#tpu.dimension_semantics<parallel>], iteration_bounds = array<i64: 1>, scalar_prefetch = 0 : i64, scratch_operands = 0 : i64, tpu.core_type = #tpu.core_type<tc>, window_params = [{transform_indices = @transform_0, window_bounds = array<i64: 1, 2048>}, {transform_indices = @transform_1, window_bounds = array<i64: 1, 2048>}]} {
    %c0 = arith.constant 0 : index
    %c0_0 = arith.constant 0 : index
    %0 = vector.load %arg1[%c0, %c0_0] : memref<1x2048xf32, #tpu.memory_space<vmem>>, vector<1x2048xf32>
    %1 = arith.negf %0 : vector<1x2048xf32>
    %2 = math.exp %1 : vector<1x2048xf32>
    %cst = arith.constant 1.000000e+00 : f32
    %3 = vector.broadcast %cst : f32 to vector<1x2048xf32>
    %4 = arith.addf %3, %2 : vector<1x2048xf32>
    %5 = arith.divf %3, %4 : vector<1x2048xf32>
    %6 = arith.mulf %0, %5 : vector<1x2048xf32>
    %c0_1 = arith.constant 0 : index
    %c0_2 = arith.constant 0 : index
    %7 = vector.load %arg2[%c0_1, %c0_2] : memref<1x2048xf32, #tpu.memory_space<vmem>>, vector<1x2048xf32>
    tpu.vector_store %arg2[%c0_1, %c0_2], %6 {strides = array<i32>} : memref<1x2048xf32, #tpu.memory_space<vmem>>, vector<1x2048xf32>,
    return
  }
  func.func @transform_0(%arg0: i32) -> (i32, i32) {
    %c0_i32 = arith.constant 0 : i32
    %c0_i32_0 = arith.constant 0 : i32
    return %arg0, %c0_i32 : i32, i32
  }
  func.func @transform_1(%arg0: i32) -> (i32, i32) {
    %c0_i32 = arith.constant 0 : i32
    %c0_i32_0 = arith.constant 0 : i32
    return %arg0, %c0_i32 : i32, i32
  }
}

</mosaic_0001>

<bundles_post_ra>
// kernel: swish.1
= control target key start
LH: loop header
LB: loop body
LE: loop exit
PB: predicated region body
PF: predicated region fallthrough
CT: control target
= control target key end

     0   :  { %s62_s0 = inlined_call_operand.vmem [shape: f32[1,2048], index: 0, kind: input, shape index: {}]   ;;  %s63_s1 = inlined_call_operand.vmem [shape: f32[1,2048], index: 1, kind: output, shape index: {}]  }
   0x1   :  { %v8_v0 = vld [vmem:[%s62_s0] sm:$0xff]  ;;  %v9_v1 = vld [vmem:[%s62_s0 + $0x8] sm:$0xff] }
   0x2   :  { %v30_v2 = vmul.f32 -1.442695, %v8_v0  ;;  %v31_v3 = vmul.f32 -1.442695, %v9_v1 }
   0x4   :  { %32 = vpow2.f32 %v30_v2 }
   0x5   :  { %34 = vpow2.f32 %v31_v3 }
  0x11   :  { %v33_v4 = vpop.eup %32 }
  0x12   :  { %v35_v5 = vpop.eup %34  ;;  %v16_v6 = vadd.f32 1.0, %v33_v4 }
  0x13   :  { %v17_v7 = vadd.f32 1.0, %v35_v5 }
  0x14   :  { %36 = vrcp.f32 %v16_v6 }
  0x15   :  { %38 = vrcp.f32 %v17_v7 }
  0x21   :  { %v37_v8 = vpop.eup %36 }
  0x22   :  { %v39_v9 = vpop.eup %38  ;;  %v22_v10 = vmul.f32 %v37_v8, %v8_v0 }
  0x23   :  { %v23_v11 = vmul.f32 %v39_v9, %v9_v1 }
  0x24   :  { %24 = vst [vmem:[%s63_s1] sm:$0xff] %v22_v10 }
  0x25   :  { %25 = vst [vmem:[%s63_s1 + $0x8] sm:$0xff] %v23_v11 }

</bundles_post_ra>
